<compile_context>
chip_gen: v5e
topology: v5e:2x2
jax: 0.10.0
libtpu: 0.0.40
codegen_flags: <defaults>
</compile_context>

<pallas_src>
import numpy as np
import jax
import jax.numpy as jnp
from jax.experimental import pallas as pl
from jax.experimental.pallas import tpu as pltpu


def _round_up(x, m):
    return ((x + m - 1) // m) * m


# ---------------------------------------------------------------------------
# Fused kernel: seg-weight + weighted entity pooling + split bilinear logits.
#   w[s]        = mean_c( seg(x)[s,c] )  == x[s] @ mean(W_seg,1) + mean(b_seg)
#   entity[e]   = sum_s mask[e,s]*w[s]*x[s]  /  sum_s mask[e,s]*w[s]
#   logits[e,:] = entity[e] @ [W_h | W_t]          (per-ENTITY, gathered later)
# ---------------------------------------------------------------------------
def _docre_fused_kernel(x_ref, mask_ref, wrow_ref, wcat_ref, bmean_ref, out_ref):
    # x_ref    : (1, Sp, H)      bf16  context_output (zero-padded along S)
    # mask_ref : (1, Te, Sp)     bf16  1.0 inside each entity's [start, end] span
    # wrow_ref : (1, H)          f32   mean(W_seg, axis=1) as a lane-dense row
    # wcat_ref : (H, 2*Lp)       bf16  [W_h | W_t], label dim padded to 128 lanes
    # bmean_ref: (1,)            f32   mean(b_seg), SMEM scalar
    # out_ref  : (1, Te, 2*Lp)   f32   per-entity head/tail logits
    x = x_ref[0]                                   # (Sp, H) bf16
    m = mask_ref[0]                                # (Te, Sp) bf16
    x32 = x.astype(jnp.float32)

    # Per-token segmentation weight, kept OFF the MXU: VPU multiply against the
    # (1,H) row (sublane broadcast) + XLU lane reduction.  An (Sp,H)@(H,1) MXU
    # dot would cost more pushes than the main pooling matmul when Ep << Sp.
    w = jnp.sum(x32 * wrow_ref[...], axis=-1, keepdims=True) + bmean_ref[0]   # (Sp,1) f32

    # Fold the weight into x (lane broadcast of the (Sp,1) column); VPU work
    # hides under the MXU / HBM pipeline.
    xw = (x32 * w).astype(jnp.bfloat16)                                       # (Sp,H)

    num = jnp.dot(m, xw, preferred_element_type=jnp.float32)                  # (Te,H)
    den = jnp.dot(m, w.astype(jnp.bfloat16),
                  preferred_element_type=jnp.float32)                         # (Te,1)

    # Padded entity rows have an all-zero mask -> den == 0 exactly; map them to
    # 1 so they pool to 0 instead of NaN.  Real spans keep torch's 1/sum(w).
    # (A real span whose learned weights cancel to exactly 0 would diverge from
    # torch's inf/NaN here — acceptable, documented.)
    safe_den = jnp.where(den == 0.0, 1.0, den)
    ent = (num * (1.0 / safe_den)).astype(jnp.bfloat16)                       # (Te,H)

    # Fused classifier: per-entity logits against the split bilinear weight.
    out_ref[0] = jnp.dot(ent, wcat_ref[...], preferred_element_type=jnp.float32)


def pallas_docre_pool_classify(x_bf16, span_mask_bf16, wrow_f32, wcat_bf16, b_mean):
    bs, s_pad, hdim = x_bf16.shape
    e_pad = span_mask_bf16.shape[1]
    n_out = wcat_bf16.shape[1]

    # Second "parallel" grid axis over entity tiles: with an odd batch (or
    # bs=1) one v7x TensorCore would otherwise idle.  x stays resident across
    # the entity axis (constant index_map), w is recomputed per tile (cheap,
    # it is off the MXU).
    if bs % 2 == 1 and e_pad % 32 == 0:
        tile_e = e_pad // 2
    else:
        tile_e = e_pad
    grid = (bs, e_pad // tile_e)

    # TODO(synk): for very long documents on v5e, add a trailing "arbitrary"
    # Sp-reduction axis accumulating num/den in VMEM scratch.
    return pl.pallas_call(
        _docre_fused_kernel,
        out_shape=jax.ShapeDtypeStruct((bs, e_pad, n_out), jnp.float32),
        grid=grid,
        in_specs=[
            pl.BlockSpec((1, s_pad, hdim), lambda b, e: (b, 0, 0)),
            pl.BlockSpec((1, tile_e, s_pad), lambda b, e: (b, e, 0)),
            pl.BlockSpec((1, hdim), lambda b, e: (0, 0)),
            pl.BlockSpec((hdim, n_out), lambda b, e: (0, 0)),
            pl.BlockSpec(memory_space=pltpu.MemorySpace.SMEM),
        ],
        out_specs=pl.BlockSpec((1, tile_e, n_out), lambda b, e: (b, e, 0)),
        compiler_params=pltpu.CompilerParams(
            dimension_semantics=("parallel", "parallel"),
            vmem_limit_bytes=32 * 1024 * 1024),
    )(x_bf16, span_mask_bf16, wrow_f32, wcat_bf16, b_mean)


# ---------------------------------------------------------------------------
# Host-side glue for the ragged python inputs (mirrors the python loops of the
# torch forward); kept OUT of the jitted dense path so nothing retraces.
# ---------------------------------------------------------------------------
def preprocess(entity_pos, hts, bs, slen):
    num_ent = max(len(e) for e in entity_pos)
    e_pad = _round_up(max(num_ent, 1), 16)     # 16: bf16 packed-sublane multiple
    s_pad = _round_up(slen, 128)               # lane multiple
    mask = np.zeros((bs, e_pad, s_pad), np.float32)
    for b in range(bs):
        for j, (s, t) in enumerate(entity_pos[b]):
            mask[b, j, s:t + 1] = 1.0          # torch: output[e[0]:e[1]+1]
    n_pairs = {len(p) for p in hts}
    # TODO(synk): ragged per-batch hts would need pair padding + masking here.
    assert len(n_pairs) == 1, "per-batch hts must have equal length"
    hts_arr = np.asarray(hts, np.int32)        # (B, P, 2)
    span_mask = jnp.asarray(mask).astype(jnp.bfloat16)
    return span_mask, jnp.asarray(hts_arr[:, :, 0]), jnp.asarray(hts_arr[:, :, 1])


def init_params(key, hdim, unet_out_dim, emb_size, block_size, num_labels):
    # self.bilinear = nn.Linear(emb_size * block_size, config.num_labels)
    assert emb_size * block_size == 2 * hdim, \
        "bilinear in_features must equal 2*hidden for forward() to type-check"
    k1, k2, k3 = jax.random.split(key, 3)
    scale = 0.02
    return {
        # segmentation_net stand-in: 1x1 channel projection H -> unet_out_dim.
        # TODO(synk): AttentionUNet internals (down/up conv stacks + attention
        # gates) are not defined in the provided module; only this channel
        # mapping is representable, and forward() only consumes its channel
        # mean, so it is fused algebraically into the pooling kernel.
        "w_seg": scale * jax.random.normal(k1, (hdim, unet_out_dim), jnp.float32),
        # positive bias keeps span-weight sums away from 0 (like a trained seg
        # net emitting positive saliency); forward() handles any values.
        "b_seg": jnp.full((unet_out_dim,), 0.5, jnp.float32),
        # bilinear classifier
        "w_bilinear": scale * jax.random.normal(
            k2, (emb_size * block_size, num_labels), jnp.float32),
        "b_bilinear": scale * jax.random.normal(k3, (num_labels,), jnp.float32),
        # head_extractor / tail_extractor / liner exist in __init__ but are
        # unused by this forward() -> not materialized.
    }


def docre_forward(params, context_output, attention_mask, span_mask, h_idx, t_idx):
    """DocREModel.forward(context_output, attention_mask, entity_pos, hts,
    labels=None) -> per-batch pair logits, stacked to (B, P, num_labels)."""
    del attention_mask                         # unused by the reference forward()
    bs, slen, hdim = context_output.shape
    s_pad = span_mask.shape[2]
    num_labels = params["b_bilinear"].shape[0]
    l_pad = _round_up(num_labels, 128)

    # segmentation net, fused to its channel mean:
    #   mean(x @ W_seg + b_seg, -1) == x @ mean(W_seg, 1) + mean(b_seg)
    wrow = jnp.mean(params["w_seg"], axis=1).reshape(1, hdim).astype(jnp.float32)  # (1,H)
    b_mean = jnp.mean(params["b_seg"]).reshape(1).astype(jnp.float32)              # (1,)

    # split bilinear: concat([e_h,e_t]) @ W + b == e_h@W[:H] + e_t@W[H:] + b,
    # so per-ENTITY logits are computed once inside the kernel and gathered
    # per pair; the (B,P,2H) intermediate never exists.
    w_bil = params["w_bilinear"]                                         # (2H, L)
    w_p = jnp.pad(w_bil, ((0, 0), (0, l_pad - num_labels)))
    w_cat = jnp.concatenate([w_p[:hdim], w_p[hdim:]], axis=1).astype(jnp.bfloat16)  # (H,2Lp)

    x = context_output
    if s_pad != slen:
        x = jnp.pad(x, ((0, 0), (0, s_pad - slen), (0, 0)))
    x = x.astype(jnp.bfloat16)

    ent_logits = pallas_docre_pool_classify(x, span_mask, wrow, w_cat, b_mean)  # (B,Ep,2Lp)

    # Slice down to num_labels BEFORE the gather (Lp padding was only for
    # lane-dense Pallas stores).
    lh = jnp.take_along_axis(ent_logits[..., :num_labels],
                             h_idx[:, :, None], axis=1)                         # (B,P,L)
    lt = jnp.take_along_axis(ent_logits[..., l_pad:l_pad + num_labels],
                             t_idx[:, :, None], axis=1)                         # (B,P,L)
    return lh + lt + params["b_bilinear"]                                       # (B,P,L)


# ---------------------------------------------------------------------------
# Pure numpy (float64) reference with the original, un-fused structure.
# ---------------------------------------------------------------------------
def reference_forward(params, context_output, entity_pos, hts):
    x_all = np.asarray(context_output, np.float64)
    w_seg = np.asarray(params["w_seg"], np.float64)
    b_seg = np.asarray(params["b_seg"], np.float64)
    w_bil = np.asarray(params["w_bilinear"], np.float64)
    b_bil = np.asarray(params["b_bilinear"], np.float64)
    preds = []
    for i in range(x_all.shape[0]):
        x = x_all[i]
        attn_map = x @ w_seg + b_seg                      # seg-net stand-in (S,C)
        ents = []
        for (s, t) in entity_pos[i]:
            emb = x[s:t + 1]
            wts = attn_map[s:t + 1].mean(axis=1, keepdims=True)
            ents.append((wts * emb).sum(axis=0) / wts.sum())
        ents = np.stack(ents)
        pairs = np.stack([np.concatenate([ents[h], ents[t]]) for h, t in hts[i]])
        preds.append(pairs @ w_bil + b_bil)
    return np.stack(preds)


if __name__ == "__main__":
    # Small shapes consistent with the module's forward():
    #   context_output (B, S, H); bilinear in_features = emb_size*block_size = 2H
    bs, slen, hdim = 2, 16, 32
    unet_out_dim = 8
    emb_size, block_size = 16, 4        # 16 * 4 == 2 * 32
    num_labels = 2                      # CDR-style label count

    key = jax.random.PRNGKey(0)
    kx, kp = jax.random.split(key)
    context_output = jax.random.normal(kx, (bs, slen, hdim), jnp.float32)
    attention_mask = jnp.ones((bs, slen), jnp.float32)

    # ragged entity spans (start, end inclusive) and head/tail index pairs
    entity_pos = [[(0, 2), (4, 7), (10, 13)], [(1, 3), (5, 5), (8, 15)]]
    hts = [[(0, 1), (1, 2), (0, 2), (2, 0)], [(0, 1), (1, 0), (1, 2), (2, 1)]]

    params = init_params(kp, hdim, unet_out_dim, emb_size, block_size, num_labels)
    span_mask, h_idx, t_idx = preprocess(entity_pos, hts, bs, slen)

    fwd = jax.jit(docre_forward)
    logits = fwd(params, context_output, attention_mask, span_mask, h_idx, t_idx)
    logits = jax.block_until_ready(logits)
    assert logits.shape == (bs, len(hts[0]), num_labels)

    ref = reference_forward(params, context_output, entity_pos, hts)
    np.testing.assert_allclose(np.asarray(logits, np.float64), ref, rtol=5e-2, atol=5e-2)
    print("KERNEL_OK")
</pallas_src>

<mosaic_0001>
module attributes {stable_mosaic.version = 11 : i64} {
  func.func @_docre_fused_kernel(%arg0: i32, %arg1: i32, %arg2: memref<1x128x32xbf16, #tpu.memory_space<vmem>>, %arg3: memref<1x16x128xbf16, #tpu.memory_space<vmem>>, %arg4: memref<1x32xf32, #tpu.memory_space<vmem>>, %arg5: memref<32x256xbf16, #tpu.memory_space<vmem>>, %arg6: memref<1xf32, #tpu.memory_space<smem>>, %arg7: memref<1x16x256xf32, #tpu.memory_space<vmem>>) attributes {dimension_semantics = [#tpu.dimension_semantics<parallel>, #tpu.dimension_semantics<parallel>], iteration_bounds = array<i64: 2, 1>, scalar_prefetch = 0 : i64, scratch_operands = 0 : i64, tpu.core_type = #tpu.core_type<tc>, window_params = [{transform_indices = @transform_0, window_bounds = array<i64: 1, 128, 32>}, {transform_indices = @transform_1, window_bounds = array<i64: 1, 16, 128>}, {pipeline_mode = #tpu.pipeline_mode<synchronous>, transform_indices = @transform_2, window_bounds = array<i64: 1, 32>}, {pipeline_mode = #tpu.pipeline_mode<synchronous>, transform_indices = @transform_3, window_bounds = array<i64: 32, 256>}, {transform_indices = @transform_4, window_bounds = array<i64: 1>}, {transform_indices = @transform_5, window_bounds = array<i64: 1, 16, 256>}]} {
    %c0 = arith.constant 0 : index
    %c0_0 = arith.constant 0 : index
    %c0_1 = arith.constant 0 : index
    %0 = vector.load %arg2[%c0, %c0_0, %c0_1] : memref<1x128x32xbf16, #tpu.memory_space<vmem>>, vector<1x128x32xbf16>
    %1 = vector.shape_cast %0 : vector<1x128x32xbf16> to vector<128x32xbf16>
    %c0_2 = arith.constant 0 : index
    %c0_3 = arith.constant 0 : index
    %c0_4 = arith.constant 0 : index
    %2 = vector.load %arg3[%c0_2, %c0_3, %c0_4] : memref<1x16x128xbf16, #tpu.memory_space<vmem>>, vector<1x16x128xbf16>
    %3 = vector.shape_cast %2 : vector<1x16x128xbf16> to vector<16x128xbf16>
    %4 = arith.extf %1 : vector<128x32xbf16> to vector<128x32xf32>
    %c0_5 = arith.constant 0 : index
    %c0_6 = arith.constant 0 : index
    %5 = vector.load %arg4[%c0_5, %c0_6] : memref<1x32xf32, #tpu.memory_space<vmem>>, vector<1x32xf32>
    %6 = vector.broadcast %5 : vector<1x32xf32> to vector<128x32xf32>
    %7 = arith.mulf %4, %6 : vector<128x32xf32>
    %cst = arith.constant dense<0.000000e+00> : vector<128xf32>
    %8 = vector.multi_reduction <add>, %7, %cst [1] : vector<128x32xf32> to vector<128xf32>
    %9 = vector.shape_cast %8 : vector<128xf32> to vector<128x1xf32>
    %c0_7 = arith.constant 0 : index
    %10 = memref.load %arg6[%c0_7] : memref<1xf32, #tpu.memory_space<smem>>
    %11 = vector.broadcast %10 : f32 to vector<128x1xf32>
    %12 = arith.addf %9, %11 : vector<128x1xf32>
    %13 = vector.broadcast %12 : vector<128x1xf32> to vector<128x32xf32>
    %14 = arith.mulf %4, %13 : vector<128x32xf32>
    %15 = arith.truncf %14 : vector<128x32xf32> to vector<128x32xbf16>
    %cst_8 = arith.constant dense<0.000000e+00> : vector<16x32xf32>
    %16 = tpu.matmul %3, %15, %cst_8 {dimension_numbers = #tpu.dot_dimension_numbers<[1], [0], [0], [1], [0, 0, 1, 1], [], []>} : vector<16x128xbf16>, vector<128x32xbf16>, vector<16x32xf32> -> vector<16x32xf32>
    %17 = arith.truncf %12 : vector<128x1xf32> to vector<128x1xbf16>
    %cst_9 = arith.constant dense<0.000000e+00> : vector<16x1xf32>
    %18 = tpu.matmul %3, %17, %cst_9 {dimension_numbers = #tpu.dot_dimension_numbers<[1], [0], [0], [1], [0, 0, 1, 1], [], []>} : vector<16x128xbf16>, vector<128x1xbf16>, vector<16x1xf32> -> vector<16x1xf32>
    %cst_10 = arith.constant 0.000000e+00 : f32
    %19 = vector.broadcast %cst_10 : f32 to vector<16x1xf32>
    %20 = arith.cmpf oeq, %18, %19 : vector<16x1xf32>
    %cst_11 = arith.constant 1.000000e+00 : f32
    %21 = vector.broadcast %cst_11 : f32 to vector<16x1xf32>
    %22 = arith.select %20, %21, %18 : vector<16x1xi1>, vector<16x1xf32>
    %cst_12 = arith.constant 1.000000e+00 : f32
    %23 = vector.broadcast %cst_12 : f32 to vector<16x1xf32>
    %24 = arith.divf %23, %22 : vector<16x1xf32>
    %25 = vector.broadcast %24 : vector<16x1xf32> to vector<16x32xf32>
    %26 = arith.mulf %16, %25 : vector<16x32xf32>
    %27 = arith.truncf %26 : vector<16x32xf32> to vector<16x32xbf16>
    %c0_13 = arith.constant 0 : index
    %c0_14 = arith.constant 0 : index
    %28 = vector.load %arg5[%c0_13, %c0_14] : memref<32x256xbf16, #tpu.memory_space<vmem>>, vector<32x256xbf16>
    %cst_15 = arith.constant dense<0.000000e+00> : vector<16x256xf32>
    %29 = tpu.matmul %27, %28, %cst_15 {dimension_numbers = #tpu.dot_dimension_numbers<[1], [0], [0], [1], [0, 0, 1, 1], [], []>} : vector<16x32xbf16>, vector<32x256xbf16>, vector<16x256xf32> -> vector<16x256xf32>
    %c0_16 = arith.constant 0 : index
    %c0_17 = arith.constant 0 : index
    %c0_18 = arith.constant 0 : index
    %30 = vector.load %arg7[%c0_16, %c0_17, %c0_18] : memref<1x16x256xf32, #tpu.memory_space<vmem>>, vector<1x16x256xf32>
    %31 = vector.shape_cast %30 : vector<1x16x256xf32> to vector<16x256xf32>
    %32 = vector.shape_cast %29 : vector<16x256xf32> to vector<1x16x256xf32>
    tpu.vector_store %arg7[%c0_16, %c0_17, %c0_18], %32 {strides = array<i32>} : memref<1x16x256xf32, #tpu.memory_space<vmem>>, vector<1x16x256xf32>,
    return
  }
  func.func @transform_0(%arg0: i32, %arg1: i32) -> (i32, i32, i32) {
    %c0_i32 = arith.constant 0 : i32
    %c0_i32_0 = arith.constant 0 : i32
    %c0_i32_1 = arith.constant 0 : i32
    return %arg0, %c0_i32, %c0_i32_0 : i32, i32, i32
  }
  func.func @transform_1(%arg0: i32, %arg1: i32) -> (i32, i32, i32) {
    %c0_i32 = arith.constant 0 : i32
    %c0_i32_0 = arith.constant 0 : i32
    return %arg0, %arg1, %c0_i32 : i32, i32, i32
  }
  func.func @transform_2(%arg0: i32, %arg1: i32) -> (i32, i32) {
    %c0_i32 = arith.constant 0 : i32
    %c0_i32_0 = arith.constant 0 : i32
    %c0_i32_1 = arith.constant 0 : i32
    return %c0_i32, %c0_i32_0 : i32, i32
  }
  func.func @transform_3(%arg0: i32, %arg1: i32) -> (i32, i32) {
    %c0_i32 = arith.constant 0 : i32
    %c0_i32_0 = arith.constant 0 : i32
    %c0_i32_1 = arith.constant 0 : i32
    return %c0_i32, %c0_i32_0 : i32, i32
  }
  func.func @transform_4(%arg0: i32, %arg1: i32) -> i32 {
    %c0_i32 = arith.constant 0 : i32
    %c0_i32_0 = arith.constant 0 : i32
    return %c0_i32 : i32
  }
  func.func @transform_5(%arg0: i32, %arg1: i32) -> (i32, i32, i32) {
    %c0_i32 = arith.constant 0 : i32
    %c0_i32_0 = arith.constant 0 : i32
    return %arg0, %arg1, %c0_i32 : i32, i32, i32
  }
}

</mosaic_0001>

<bundles_post_ra>
// kernel: docre_forward.1
= control target key start
LH: loop header
LB: loop body
LE: loop exit
PB: predicated region body
PF: predicated region fallthrough
CT: control target
= control target key end

     0   :  { %s859_s20 = smov 0   ;;  %s861_s21 = smov 0   ;;  %s1087_s0 = inlined_call_operand.vmem [shape: bf16[2,128,32], index: 0, kind: input, shape index: {}]   ;;  %s1088_s1 = inlined_call_operand.vmem [shape: bf16[2,16,128], index: 1, kind: input, shape index: {}]   ;;  %s1089_s2 = inlined_call_operand.vmem [shape: f32[1,32], index: 2, kind: input, shape index: {}]   ;;  %s1090_s3 = inlined_call_operand.vmem [shape: bf16[32,256], index: 3, kind: input, shape index: {}]   ;;  %s1091_s4 = inlined_call_operand.<no memory space> [shape: f32[1], index: 4, kind: input, shape index: {}]   ;;  %s1092_s5 = inlined_call_operand.vmem [shape: f32[2,16,256], index: 5, kind: output, shape index: {}]  }
   0x1   :  { %10 = sst [smem:[#allocation2]] %s1091_s4  ;;  %s863_s22 = smov 0  }
   0x2 LB: > { %s28_s4 = sadd.s32 1, %s819_s21  ;;  %p690_p0 = scmp.ge.s32.totalorder %s823_s22, 1  ;;  %s823_s22 = sphi %s863_s22, %s16_s22   ;;  %s819_s21 = sphi %s861_s21, %s1094_s21   ;;  %s815_s20 = sphi %s859_s20, %s1093_s20  }
   0x3   : > { %p30_p1 = scmp.ge.s32.totalorder %s28_s4, 2  ;;  %p219_p2 = scmp.lt.s32.totalorder %s823_s22, 3 }
   0x5   : > { %s1096_s4 = smov (%p30_p1, %s28_s4), 0  ;;  %p220_p3 = pnand %p690_p0, %p219_p2 }
   0x6   : > { %p261_p4 = scmp.lt.s32.totalorder (!%p220_p3), %s815_s20, 1  ;;  %s391_s29 = sld [smem:[#allocation2]] (!%p220_p3) }
   0x7   : > { %223 = sbr.rel (%p220_p3) target bundleno = 590 (0x24e), region = 40 }
   0xc   : > { %s1098_s20 = smov (!%p261_p4, %s815_s20), 1  ;;  %v888_v0 = vld [vmem:[%s1089_s2] ss:$0 sm:$0xff]  ;;  %vm342_vm0 = vcmask 261120   ;;  %v994_v60 = vstv %s391_s29 }
   0xd   : > { %s721_s23 = sshll.u32 %s1098_s20, 6  ;;  %s722_s30 = sshll.u32 %s1098_s20, 3 }
   0xe   : > { %s883_s26 = scalar_lea.vmem %s1087_s0, %s721_s23  ;;  %s274_s8 = scalar_lea.vmem %s1088_s1, %s722_s30 }
   0xf   : > { %v891_v1 = vld [vmem:[%s883_s26 + $0x38] sm:$0xff]   ;;  %v894_v2 = vld [vmem:[%s883_s26 + $0x30] sm:$0xff]   ;;  %v897_v3 = vld [vmem:[%s883_s26 + $0x28] sm:$0xff]   ;;  %s723_s28 = sshll.u32 %s1098_s20, 5 }
  0x10   : > { %v759_v4 = vunpack.c.l.bf16 %v891_v1  ;;  %v755_v5 = vunpack.c.l.bf16 %v894_v2  ;;  %v751_v6 = vunpack.c.l.bf16 %v897_v3  ;;  %v760_v7 = vunpack.c.h.bf16 %v891_v1  ;;  %v927_v19 = vld [vmem:[%s883_s26 + $0x20] sm:$0xff]   ;;  %v930_v20 = vld [vmem:[%s883_s26 + $0x18] sm:$0xff]   ;;  %v948_v30 = vld [vmem:[%s883_s26 + $0x10] sm:$0xff]   ;;  %s285_s6 = scalar_lea.vmem %s1092_s5, %s723_s28 }
  0x11   : > { %v756_v11 = vunpack.c.h.bf16 %v894_v2  ;;  %v752_v12 = vunpack.c.h.bf16 %v897_v3  ;;  %v748_v23 = vunpack.c.h.bf16 %v927_v19  ;;  %v747_v24 = vunpack.c.l.bf16 %v927_v19  ;;  %v966_v40 = vld [vmem:[%s883_s26 + $0x8] sm:$0xff]   ;;  %v969_v41 = vld [vmem:[%s883_s26] sm:$0xff]  }
  0x12   : > { %v340_v8 = vmul.f32 %v888_v0, %v759_v4  ;;  %v338_v9 = vmul.f32 %v888_v0, %v755_v5  ;;  %v336_v10 = vmul.f32 %v888_v0, %v751_v6  ;;  %v341_v16 = vmul.f32 %v888_v0, %v760_v7 }
  0x13   : > { %v339_v17 = vmul.f32 %v888_v0, %v756_v11  ;;  %v337_v18 = vmul.f32 %v888_v0, %v752_v12  ;;  %v743_v26 = vunpack.c.l.bf16 %v930_v20  ;;  %v335_v27 = vmul.f32 %v888_v0, %v748_v23 }
  0x14   : > { %v385_v13 = vsel %vm342_vm0, %v340_v8, 0.0  ;;  %v379_v14 = vsel %vm342_vm0, %v338_v9, 0.0  ;;  %v373_v15 = vsel %vm342_vm0, %v336_v10, 0.0  ;;  %v388_v21 = vsel %vm342_vm0, %v341_v16, 0.0 }
  0x15   : > { %386 = vadd.xlane.f32.xlu0 %v385_v13  ;;  %380 = vadd.xlane.f32.xlu1 %v379_v14  ;;  %v382_v22 = vsel %vm342_vm0, %v339_v17, 0.0  ;;  %v376_v25 = vsel %vm342_vm0, %v337_v18, 0.0  ;;  %v334_v28 = vmul.f32 %v888_v0, %v747_v24  ;;  %v332_v29 = vmul.f32 %v888_v0, %v743_v26 }
  0x16   : > { %374 = vadd.xlane.f32.xlu2 %v373_v15  ;;  %v370_v31 = vsel %vm342_vm0, %v335_v27, 0.0  ;;  %v744_v33 = vunpack.c.h.bf16 %v930_v20  ;;  %v739_v34 = vunpack.c.l.bf16 %v948_v30  ;;  %v740_v36 = vunpack.c.h.bf16 %v948_v30 }
  0x17   : > { %v367_v32 = vsel %vm342_vm0, %v334_v28, 0.0  ;;  %v361_v35 = vsel %vm342_vm0, %v332_v29, 0.0  ;;  %v736_v44 = vunpack.c.h.bf16 %v966_v40  ;;  %v735_v45 = vunpack.c.l.bf16 %v966_v40 }
  0x18   : > { %v333_v37 = vmul.f32 %v888_v0, %v744_v33  ;;  %v330_v38 = vmul.f32 %v888_v0, %v739_v34  ;;  %v331_v39 = vmul.f32 %v888_v0, %v740_v36  ;;  %v731_v47 = vunpack.c.l.bf16 %v969_v41 }
  0x19   : > { %v329_v48 = vmul.f32 %v888_v0, %v736_v44  ;;  %v328_v49 = vmul.f32 %v888_v0, %v735_v45  ;;  %v732_v53 = vunpack.c.h.bf16 %v969_v41 }
  0x1a   : > { %v364_v42 = vsel %vm342_vm0, %v333_v37, 0.0  ;;  %v355_v43 = vsel %vm342_vm0, %v330_v38, 0.0  ;;  %v358_v46 = vsel %vm342_vm0, %v331_v39, 0.0  ;;  %v326_v50 = vmul.f32 %v888_v0, %v731_v47 }
  0x1b   : > { %v352_v51 = vsel %vm342_vm0, %v329_v48, 0.0  ;;  %v349_v52 = vsel %vm342_vm0, %v328_v49, 0.0  ;;  %v327_v55 = vmul.f32 %v888_v0, %v732_v53 }
  0x1c   : > { %v343_v54 = vsel %vm342_vm0, %v326_v50, 0.0 }
  0x1d   : > { %389 = vadd.xlane.f32.xlu0 %v388_v21  ;;  %383 = vadd.xlane.f32.xlu1 %v382_v22  ;;  %v346_v56 = vsel %vm342_vm0, %v327_v55, 0.0 }
  0x1e   : > { %377 = vadd.xlane.f32.xlu2 %v376_v25 }
  0x25   : > { %371 = vadd.xlane.f32.xlu1 %v370_v31  ;;  %368 = vadd.xlane.f32.xlu0 %v367_v32 }
  0x26   : > { %362 = vadd.xlane.f32.xlu2 %v361_v35 }
  0x2d   : > { %365 = vadd.xlane.f32.xlu0 %v364_v42  ;;  %356 = vadd.xlane.f32.xlu1 %v355_v43 }
  0x2e   : > { %359 = vadd.xlane.f32.xlu2 %v358_v46 }
  0x35   : > { %353 = vadd.xlane.f32.xlu1 %v352_v51  ;;  %350 = vadd.xlane.f32.xlu0 %v349_v52 }
  0x36   : > { %344 = vadd.xlane.f32.xlu2 %v343_v54 }
  0x3d   : > { %347 = vadd.xlane.f32.xlu0 %v346_v56 }
  0x88   : > { %v387_v57 = vpop.xlane.xlu0 %386  ;;  %v381_v58 = vpop.xlane.xlu1 %380 }
  0x89   : > { %v375_v59 = vpop.xlane.xlu2 %374  ;;  %v407_v61 = vadd.f32 %v994_v60, %v387_v57  ;;  %v405_v0 = vadd.f32 %v994_v60, %v381_v58 }
  0x8a   : > { %v403_v16 = vadd.f32 %v994_v60, %v375_v59 }
  0x8b   : > { %v423_v14 = vmul.f32 %v759_v4, %v407_v61  ;;  %v421_v22 = vmul.f32 %v755_v5, %v405_v0 }
  0x8c   : > { %v419_v4 = vmul.f32 %v751_v6, %v403_v16 }
  0x90   : > { %v390_v62 = vpop.xlane.xlu0 %389  ;;  %v384_v63 = vpop.xlane.xlu1 %383 }
  0x91   : > { %v408_v8 = vadd.f32 %v994_v60, %v390_v62  ;;  %v406_v9 = vadd.f32 %v994_v60, %v384_v63  ;;  %v378_v10 = vpop.xlane.xlu2 %377  ;;  %v825_v63 = vmov 0  }
  0x92   : > { %v404_v18 = vadd.f32 %v994_v60, %v378_v10  ;;  %793 = vset.pattern.permute.xlu1 %v825_v63  ;;  %794 = vset.pattern.permute.xlu2 %v825_v63 }
  0x93   : > { %v460_v13 = vpack.c.bf16 %v408_v8, %v407_v61  ;;  %v424_v15 = vmul.f32 %v760_v7, %v408_v8  ;;  %v422_v17 = vmul.f32 %v756_v11, %v406_v9  ;;  %v459_v25 = vpack.c.bf16 %v406_v9, %v405_v0  ;;  %795 = vset.pattern.permute.xlu0 %v825_v63 }
  0x94   : > { %v420_v7 = vmul.f32 %v752_v12, %v404_v18  ;;  %v458_v2 = vpack.c.bf16 %v404_v18, %v403_v16 }
  0x95   : > { %461 = vmatpush.bf16.msra.mxu1 %v460_v13  ;;  %v432_v21 = vpack.c.bf16 %v424_v15, %v423_v14  ;;  %v431_v29 = vpack.c.bf16 %v422_v17, %v421_v22 }
  0x96   : > { %v430_v3 = vpack.c.bf16 %v420_v7, %v419_v4 }
  0x97   : > { %439 = vmatpush.bf16.msra.mxu0 %v432_v21 }
  0x98   : > { %v372_v27 = vpop.xlane.xlu1 %371  ;;  %v369_v1 = vpop.xlane.xlu0 %368 }
  0x99   : > { %v402_v28 = vadd.f32 %v994_v60, %v372_v27  ;;  %v401_v11 = vadd.f32 %v994_v60, %v369_v1  ;;  %462 = vmatpush.bf16.msra.mxu1 %v459_v25  ;;  %v363_v31 = vpop.xlane.xlu2 %362 }
  0x9a   : > { %v399_v32 = vadd.f32 %v994_v60, %v363_v31  ;;  %v711_v31 = vld [vmem:[%s1090_s3 + $0x10] sm:$0xf] }
  0x9b   : > { %440 = vmatpush.bf16.msra.mxu0 %v431_v29  ;;  %v418_v5 = vmul.f32 %v748_v23, %v402_v28  ;;  %v417_v6 = vmul.f32 %v747_v24, %v401_v11  ;;  %v457_v12 = vpack.c.bf16 %v402_v28, %v401_v11 }
  0x9c   : > { %v415_v38 = vmul.f32 %v743_v26, %v399_v32 }
  0x9d   : > { %463 = vmatpush.bf16.msra.mxu1 %v458_v2  ;;  %v429_v23 = vpack.c.bf16 %v418_v5, %v417_v6  ;;  %v728_v2 = vld [vmem:[%s1090_s3 + $0x14] sm:$0xf0]  ;;  %v727_v5 = vld [vmem:[%s1090_s3 + $0x14] sm:$0xf] }
  0x9e   : > { %v712_v6 = vor.u32 %v728_v2, %v711_v31 }
  0x9f   : > { %441 = vmatpush.bf16.msra.mxu0 %v430_v3 }
  0xa0   : > { %v366_v35 = vpop.xlane.xlu0 %365  ;;  %v357_v37 = vpop.xlane.xlu1 %356  ;;  %555 = vmatpush.bf16.msra.mxu2 %v712_v6 }
  0xa1   : > { %v400_v39 = vadd.f32 %v994_v60, %v366_v35  ;;  %v397_v42 = vadd.f32 %v994_v60, %v357_v37  ;;  %464 = vmatpush.bf16.msra.mxu1 %v457_v12  ;;  %v360_v43 = vpop.xlane.xlu2 %359  ;;  %v703_v12 = vld [vmem:[%s1090_s3] sm:$0xf]  ;;  %v726_v35 = vld [vmem:[%s1090_s3 + $0x4] sm:$0xf0]  ;;  %v725_v37 = vld [vmem:[%s1090_s3 + $0x4] sm:$0xf] }
  0xa2   : > { %v398_v19 = vadd.f32 %v994_v60, %v360_v43 }
  0xa3   : > { %v416_v24 = vmul.f32 %v744_v33, %v400_v39  ;;  %v413_v46 = vmul.f32 %v739_v34, %v397_v42  ;;  %442 = vmatpush.bf16.msra.mxu0 %v429_v23  ;;  %v456_v48 = vpack.c.bf16 %v400_v39, %v399_v32  ;;  %v713_v32 = vld [vmem:[%s1090_s3 + $0x18] sm:$0xf0]  ;;  %v705_v39 = vld [vmem:[%s1090_s3 + $0x8] sm:$0xf0] }
  0xa4   : > { %v414_v26 = vmul.f32 %v740_v36, %v398_v19  ;;  %v455_v50 = vpack.c.bf16 %v398_v19, %v397_v42  ;;  %v716_v3 = vor.u32 %v727_v5, %v713_v32  ;;  %v708_v42 = vor.u32 %v725_v37, %v705_v39 }
  0xa5   : > { %465 = vmatpush.bf16.msra.mxu1 %v456_v48  ;;  %v428_v49 = vpack.c.bf16 %v416_v24, %v415_v38  ;;  %v704_v38 = vor.u32 %v726_v35, %v703_v12 }
  0xa6   : > { %v427_v51 = vpack.c.bf16 %v414_v26, %v413_v46  ;;  %569 = vmatpush.bf16.msra.mxu3 %v716_v3 }
  0xa7   : > { %443 = vmatpush.bf16.msra.mxu0 %v428_v49  ;;  %556 = vmatpush.bf16.msra.mxu2 %v704_v38 }
  0xa8   : > { %v354_v52 = vpop.xlane.xlu1 %353  ;;  %v351_v54 = vpop.xlane.xlu0 %350 }
  0xa9   : > { %v396_v55 = vadd.f32 %v994_v60, %v354_v52  ;;  %v395_v20 = vadd.f32 %v994_v60, %v351_v54  ;;  %466 = vmatpush.bf16.msra.mxu1 %v455_v50  ;;  %v345_v33 = vpop.xlane.xlu2 %344 }
  0xaa   : > { %v393_v57 = vadd.f32 %v994_v60, %v345_v33  ;;  %570 = vmatpush.bf16.msra.mxu3 %v708_v42 }
  0xab   : > { %v412_v34 = vmul.f32 %v736_v44, %v396_v55  ;;  %v411_v30 = vmul.f32 %v735_v45, %v395_v20  ;;  %444 = vmatpush.bf16.msra.mxu0 %v427_v51  ;;  %v454_v36 = vpack.c.bf16 %v396_v55, %v395_v20  ;;  %v724_v45 = vld [vmem:[%s274_s8] sm:$0xff] }
  0xac   : > { %v409_v61 = vmul.f32 %v731_v47, %v393_v57 }
  0xad   : > { %467 = vmatpush.bf16.msra.mxu1 %v454_v36  ;;  %v426_v56 = vpack.c.bf16 %v412_v34, %v411_v30 }
  0xaf   : > { %445 = vmatpush.bf16.msra.mxu0 %v426_v56 }
  0xb0   : > { %v348_v58 = vpop.xlane.xlu0 %347 }
  0xb1   : > { %v394_v59 = vadd.f32 %v994_v60, %v348_v58 }
  0xb3   : > { %v410_v40 = vmul.f32 %v732_v53, %v394_v59  ;;  %v453_v44 = vpack.c.bf16 %v394_v59, %v393_v57 }
  0xb5   : > { %468 = vmatpush.bf16.msra.mxu1 %v453_v44  ;;  %v425_v62 = vpack.c.bf16 %v410_v40, %v409_v61 }
  0xb7   : > { %446 = vmatpush.bf16.msra.mxu0 %v425_v62 }
  0xb8   : > { %469 = vmatmul.bf16.vlgmr.msra.gmra.mxu1 %v724_v45 }
  0xba   : > { %447 = vmatmul.bf16.vlgmr.msra.gmra.mxu0 %v724_v45 }
 0x135   : > { %v470_v60 = vpop.f32.mrf.mxu1 }
 0x136   : > { %vm475_vm1 = vcmp.eq.f32.partialorder %v470_v60, 0.0 }
 0x137   : > { %v477_v47 = vsel %vm475_vm1, 1.0, %v470_v60  ;;  %v448_v23 = vpop.f32.mrf.mxu0 }
 0x138   : > { %797 = vrcp.f32 %v477_v47  ;;  %v490_v0 = vand.u32 2147483648, %v477_v47  ;;  %v488_v14 = vand.u32 2147483647, %v477_v47  ;;  %vm484_vm4 = vweird.f32 %v477_v47 }
 0x13a   : > { %v491_v17 = vor.u32 1.1754944e-38, %v490_v0  ;;  %vm489_vm6 = vcmp.eq.f32.partialorder %v488_v14, 8.507059e+37 }
 0x13d   : > { %v472_v8 = vpop.f32.mrf.mxu1 }
 0x13e   : > { %v798_v9 = vpop.eup %797  ;;  %vm476_vm2 = vcmp.eq.f32.partialorder %v472_v8, 0.0 }
 0x13f   : > { %v480_v41 = vmul.f32 %v798_v9, %v477_v47  ;;  %v478_v53 = vsel %vm476_vm2, 1.0, %v472_v8  ;;  %vm485_vm3 = vweird.f32 %v798_v9  ;;  %v450_v19 = vpop.f32.mrf.mxu0 }
 0x140   : > { %799 = vrcp.f32 %v478_v53  ;;  %vm486_vm5 = vmor %vm484_vm4, %vm485_vm3  ;;  %v505_v4 = vand.u32 2147483648, %v478_v53  ;;  %v503_v1 = vand.u32 2147483647, %v478_v53  ;;  %vm499_vm8 = vweird.f32 %v478_v53 }
 0x141   : > { %v481_v10 = vsub.f32 1.0, %v480_v41 }
 0x142   : > { %v506_v28 = vor.u32 1.1754944e-38, %v505_v4  ;;  %vm504_vm10 = vcmp.eq.f32.partialorder %v503_v1, 8.507059e+37 }
 0x143   : > { %v482_v13 = vmul.f32 %v798_v9, %v481_v10 }
 0x145   : > { %v483_v15 = vadd.f32 %v798_v9, %v482_v13 }
 0x146   : > { %v800_v16 = vpop.eup %799 }
 0x147   : > { %v495_v18 = vmul.f32 %v800_v16, %v478_v53  ;;  %v487_v21 = vsel %vm486_vm5, %v798_v9, %v483_v15  ;;  %vm500_vm7 = vweird.f32 %v800_v16 }
 0x148   : > { %v492_v22 = vsel %vm489_vm6, %v491_v17, %v487_v21  ;;  %vm501_vm9 = vmor %vm499_vm8, %vm500_vm7 }
 0x149   : > { %v496_v25 = vsub.f32 1.0, %v495_v18  ;;  %511 = vperm.xlu1 %793, %v492_v22  }
 0x14b   : > { %v497_v27 = vmul.f32 %v800_v16, %v496_v25 }
 0x14d   : > { %v498_v7 = vadd.f32 %v800_v16, %v497_v27 }
 0x14f   : > { %v502_v11 = vsel %vm501_vm9, %v800_v16, %v498_v7 }
 0x150   : > { %v507_v29 = vsel %vm504_vm10, %v506_v28, %v502_v11 }
 0x151   : > { %516 = vperm.xlu2 %794, %v507_v29  }
 0x1ab   : > { %v517_v43 = vpop.permute.xlu2 %516 }
 0x1ac   : > { %v520_v46 = vmul.f32 %v517_v43, %v450_v19 }
 0x1bb   : > { %v512_v24 = vpop.permute.xlu1 %511 }
 0x1bc   : > { %v519_v48 = vmul.f32 %v512_v24, %v448_v23 }
 0x1be   : > { %v521_v26 = vpack.c.bf16 %v520_v46, %v519_v48 }
 0x1c0   : > { %717 = vmatmul.msk.bf16.vlgmr.msra.gmra.mxu2 %vm342_vm0, %v521_v26  ;;  %718 = vmatmul.msk.bf16.vlgmr.msra.gmra.mxu3 %vm342_vm0, %v521_v26 }
 0x243   : > { %v558_v49 = vpop.f32.mrf.mxu2  ;;  %v572_v50 = vpop.f32.mrf.mxu3 }
 0x244   : > { %577 = vst [vmem:[%s285_s6] sm:$0xff] %v558_v49 }
 0x245   : > { %578 = vst [vmem:[%s285_s6 + $0x8] sm:$0xff] %v572_v50 }
 0x24b   : > { %v560_v51 = vpop.f32.mrf.mxu2  ;;  %v574_v52 = vpop.f32.mrf.mxu3 }
 0x24c   : > { %579 = vst [vmem:[%s285_s6 + $0x10] sm:$0xff] %v560_v51 }
 0x24d   : > { %580 = vst [vmem:[%s285_s6 + $0x18] sm:$0xff] %v574_v52 }
 0x24e PF: > { %s16_s22 = sadd.s32 1, %s823_s22   ;;  %s1093_s20 = smov %s819_s21 }
 0x24f   : > { %p13_p5 = scmp.ge.s32.totalorder %s16_s22, 4   ;;  %s1094_s21 = smov %s1096_s4 }
 0x251   :  { %15 = sbr.rel (!%p13_p5) target bundleno = 2 (0x2), region = 73 }

</bundles_post_ra>
